<compile_context>
chip_gen: v5e
topology: v5e:2x2
jax: 0.10.0
libtpu: 0.0.40
codegen_flags: <defaults>
</compile_context>

<pallas_src>
import jax
import jax.numpy as jnp
from jax.experimental import pallas as pl
from jax.experimental.pallas import tpu as pltpu

# ----------------------------- configuration --------------------------------
CLASSES = 8          # stand-in for the 150 ADE classes (kept small)
IN_CH = 4
BATCH = 2
HW_SIDE = 16
LANES = 128          # lane width used to pad the small-output slab
NUM_SAMPLES = 5      # module default (unused on the 'class_residuals' path)
DROPOUT = 0.3        # module default (unused on the 'class_residuals' path)
DROP_TYPE = "class_residuals"   # module default


# ------------------------------ Pallas kernel -------------------------------
def _encnet_fused_kernel(x_ref,        # VMEM (1, C, HW)   this image, channels-first
                         w_ref,        # VMEM (3K, C)      rows = [wseg^T; waux^T; wcls^T]
                         b_sa_ref,     # VMEM (2K, 1)      [bseg; baux]
                         segaux_ref,   # out  (1, 2K, HW)  lane-dense [seg; aux] logits
                         small_ref):   # out  (1, K, 128)  [rmat(K,K) | present(K,1) | 0-pad]
    x = x_ref[0]                                     # (C, HW)
    w = w_ref[...]                                   # (3K, C)
    C, HW = x.shape
    K = w.shape[0] // 3

    # Fused 1x1-conv heads: one 2D (3K, C) x (C, HW) matmul, no batch broadcast.
    # TODO(synk): with real C~2048, cast x/w to bf16 and tile the contraction.
    hz = jnp.dot(w, x, preferred_element_type=jnp.float32)      # (3K, HW)

    sa = hz[:2 * K, :] + b_sa_ref[...]               # seg & aux (+bias), (2K, HW)
    seg = sa[:K, :]                                  # (K, HW)
    z = hz[2 * K:, :]                                # per-pixel cls logits, no bias

    # predicted_mask = seg.max(0)[1]: per-pixel argmax, lowest index on ties,
    # kept entirely in int32 (no float round-trips).
    iota_k = jax.lax.broadcasted_iota(jnp.int32, (K, HW), 0)    # class id per row
    is_max = seg == jnp.max(seg, axis=0, keepdims=True)
    amax = jnp.min(jnp.where(is_max, iota_k, K), axis=0, keepdims=True)   # (1, HW) i32
    onehot = (amax == iota_k).astype(jnp.float32)                         # (K, HW)

    # Which classes appear in THIS image's predicted mask (combined over the
    # batch in the wrapper, matching torch.unique over the whole mask).
    present = jnp.max(onehot, axis=1, keepdims=True)                      # (K, 1)

    # Drop-class residual matrix for ALL K candidate drop classes at once.
    # Since the stand-in classification head is GAP + linear, dropping class m
    # shifts the pooled features by -(per-class pixel sum)/HW, so
    #   rmat[m, j] = classification[j] - classification_drop_m[j]
    #              = (1/HW) * sum_{pixels n with argmax==m} z[j, n]
    # Lanes-vs-lanes contraction -> MXU transposed-matmul path (no vxpose).
    # TODO(synk): this closed form assumes the GAP denominator stays HW after
    # zeroing dropped pixels, which is exactly what the stand-in head does.
    rmat = jax.lax.dot_general(
        onehot, z, (((1,), (1,)), ((), ())),
        preferred_element_type=jnp.float32) * (1.0 / HW)                  # (K, K)

    # Lane-dense stores: one (1, 2K, HW) slab + one (1, K, 128) padded slab.
    segaux_ref[...] = sa[None]
    small_ref[...] = jnp.zeros_like(small_ref)
    small_ref[:, :, :K] = rmat[None]
    small_ref[:, :, K:K + 1] = present[None]


def _encnet_pallas(x_flat, w_all, b_sa):
    """Fused forward + all-drop-class residual pass, batch-parallel grid."""
    B, C, HW = x_flat.shape
    K3 = w_all.shape[0]
    K = K3 // 3

    return pl.pallas_call(
        _encnet_fused_kernel,
        out_shape=(
            jax.ShapeDtypeStruct((B, 2 * K, HW), jnp.float32),   # [seg; aux] logits
            jax.ShapeDtypeStruct((B, K, LANES), jnp.float32),    # [rmat | present | pad]
        ),
        grid_spec=pltpu.PrefetchScalarGridSpec(
            num_scalar_prefetch=0,
            grid=(B,),
            in_specs=[
                pl.BlockSpec((1, C, HW), lambda b: (b, 0, 0)),   # this image's features
                pl.BlockSpec((K3, C), lambda b: (0, 0)),         # fused head weights
                pl.BlockSpec((2 * K, 1), lambda b: (0, 0)),      # seg/aux biases
            ],
            out_specs=[
                pl.BlockSpec((1, 2 * K, HW), lambda b: (b, 0, 0)),
                pl.BlockSpec((1, K, LANES), lambda b: (b, 0, 0)),
            ],
        ),
        compiler_params=pltpu.CompilerParams(
            dimension_semantics=("parallel",)),                  # 2 TCs on v7x
    )(x_flat, w_all, b_sa)


# ------------------------------ EncNet.forward -------------------------------
@jax.jit
def encnet_forward(x, params):
    """Default path of EncNet.forward: correction=True, drop_type='class_residuals',
    y=None.  Returns (seg, aux, classification, residual)."""
    B, C, H, W = x.shape
    K = params["wseg"].shape[1]
    HW = H * W

    # channels-first + flattened spatial: pure reshape, no transpose needed.
    x_flat = x.reshape(B, C, HW)

    # fuse the three 1x1-conv heads into one weight matrix (done once, tiny).
    w_all = jnp.concatenate(
        [params["wseg"].T, params["waux"].T, params["wcls"].T], axis=0)        # (3K, C)
    b_sa = jnp.concatenate(
        [params["bseg"].reshape(K, 1), params["baux"].reshape(K, 1)], axis=0)  # (2K, 1)

    segaux, small = _encnet_pallas(x_flat, w_all, b_sa)

    seg = segaux[:, :K, :].reshape(B, K, H, W)        # (B, K, H, W) — no transpose
    aux = segaux[:, K:, :].reshape(B, K, H, W)

    # unpack the lane-dense small slab
    rmat = small[:, :, :K]                            # (B, K_drop, K) = cls - cls_drop_m
    present = jnp.max(small[:, :, K], axis=0) > 0.5   # (K,) class appears in any image

    # classification = GAP(z) + bias = sum over drop classes of rmat (+ bias),
    # since the argmax one-hot map partitions every pixel (no in-kernel mean).
    classification = jnp.sum(rmat, axis=1) + params["bcls"].reshape(1, K)      # (B, K)

    # torch.unique(predicted_mask) is the sorted list of present classes; loop
    # position i of that list writes residual[:, i].  Reproduced on-device
    # (no host sync): class m with presence-rank i contributes rmat[:, m, i].
    slot = jnp.cumsum(present.astype(jnp.int32)) - 1                   # rank of class m
    sel = (present[:, None]
           & (slot[:, None] == jnp.arange(K)[None, :])).astype(jnp.float32)    # (K, K)
    residual = jnp.einsum('bmi,mi->bi', rmat, sel)    # (B, K); unused slots stay 0

    # TODO(synk): 'rand' / 'classes' drop paths (torch.empty_like dist buffers +
    # correction Linear layers + sigmoid reweighting) are not exercised on the
    # default 'class_residuals' path, matching PyTorch's early return.
    return seg, aux, classification, residual


# ------------------------------- parameters ----------------------------------
def make_params(key, in_ch=IN_CH, classes=CLASSES):
    ks = jax.random.split(key, 8)
    p = {
        # stand-in backbone heads
        "wseg": jax.random.normal(ks[0], (in_ch, classes), jnp.float32) * 0.5,
        "bseg": jax.random.normal(ks[1], (1, classes), jnp.float32) * 0.1,
        "waux": jax.random.normal(ks[2], (in_ch, classes), jnp.float32) * 0.5,
        "baux": jax.random.normal(ks[3], (1, classes), jnp.float32) * 0.1,
        "wcls": jax.random.normal(ks[4], (in_ch, classes), jnp.float32) * 0.5,
        "bcls": jax.random.normal(ks[5], (1, classes), jnp.float32) * 0.1,
        # correction layers from __init__ (nn.Linear 4K->4K and 4K->K); present
        # but unused on the default 'class_residuals' path, same as PyTorch.
        "w_corr_extra": jax.random.normal(ks[6], (4 * classes, 4 * classes), jnp.float32) * 0.05,
        "b_corr_extra": jnp.zeros((4 * classes,), jnp.float32),
        "w_corr": jax.random.normal(ks[7], (classes, 4 * classes), jnp.float32) * 0.05,
        "b_corr": jnp.zeros((classes,), jnp.float32),
    }
    return p


# ---------------------------------- main --------------------------------------
if __name__ == "__main__":
    key = jax.random.PRNGKey(0)
    k_x, k_p = jax.random.split(key)

    x = jax.random.normal(k_x, (BATCH, IN_CH, HW_SIDE, HW_SIDE), jnp.float32)  # NCHW
    params = make_params(k_p)

    seg, aux, classification, residual = encnet_forward(x, params)
    jax.block_until_ready((seg, aux, classification, residual))

    assert seg.shape == (BATCH, CLASSES, HW_SIDE, HW_SIDE)
    assert aux.shape == (BATCH, CLASSES, HW_SIDE, HW_SIDE)
    assert classification.shape == (BATCH, CLASSES)
    assert residual.shape == (BATCH, CLASSES)

    print("KERNEL_OK")
</pallas_src>

<mosaic_0001>
module attributes {stable_mosaic.version = 11 : i64} {
  func.func @_encnet_fused_kernel(%arg0: i32, %arg1: memref<1x4x256xf32, #tpu.memory_space<vmem>>, %arg2: memref<24x4xf32, #tpu.memory_space<vmem>>, %arg3: memref<16x1xf32, #tpu.memory_space<vmem>>, %arg4: memref<1x16x256xf32, #tpu.memory_space<vmem>>, %arg5: memref<1x8x128xf32, #tpu.memory_space<vmem>>) attributes {dimension_semantics = [#tpu.dimension_semantics<parallel>], iteration_bounds = array<i64: 2>, scalar_prefetch = 0 : i64, scratch_operands = 0 : i64, tpu.core_type = #tpu.core_type<tc>, window_params = [{transform_indices = @transform_0, window_bounds = array<i64: 1, 4, 256>}, {pipeline_mode = #tpu.pipeline_mode<synchronous>, transform_indices = @transform_1, window_bounds = array<i64: 24, 4>}, {pipeline_mode = #tpu.pipeline_mode<synchronous>, transform_indices = @transform_2, window_bounds = array<i64: 16, 1>}, {transform_indices = @transform_3, window_bounds = array<i64: 1, 16, 256>}, {transform_indices = @transform_4, window_bounds = array<i64: 1, 8, 128>}]} {
    %c0 = arith.constant 0 : index
    %c0_0 = arith.constant 0 : index
    %c0_1 = arith.constant 0 : index
    %0 = vector.load %arg1[%c0, %c0_0, %c0_1] : memref<1x4x256xf32, #tpu.memory_space<vmem>>, vector<1x4x256xf32>
    %1 = vector.shape_cast %0 : vector<1x4x256xf32> to vector<4x256xf32>
    %c0_2 = arith.constant 0 : index
    %c0_3 = arith.constant 0 : index
    %2 = vector.load %arg2[%c0_2, %c0_3] : memref<24x4xf32, #tpu.memory_space<vmem>>, vector<24x4xf32>
    %cst = arith.constant dense<0.000000e+00> : vector<24x256xf32>
    %3 = tpu.matmul %2, %1, %cst {dimension_numbers = #tpu.dot_dimension_numbers<[1], [0], [0], [1], [0, 0, 1, 1], [], []>} : vector<24x4xf32>, vector<4x256xf32>, vector<24x256xf32> -> vector<24x256xf32>
    %4 = vector.extract_strided_slice %3 {offsets = [0, 0], sizes = [16, 256], strides = [1, 1]} : vector<24x256xf32> to vector<16x256xf32>
    %c0_4 = arith.constant 0 : index
    %c0_5 = arith.constant 0 : index
    %5 = vector.load %arg3[%c0_4, %c0_5] : memref<16x1xf32, #tpu.memory_space<vmem>>, vector<16x1xf32>
    %6 = vector.broadcast %5 : vector<16x1xf32> to vector<16x256xf32>
    %7 = arith.addf %4, %6 : vector<16x256xf32>
    %8 = vector.extract_strided_slice %7 {offsets = [0, 0], sizes = [8, 256], strides = [1, 1]} : vector<16x256xf32> to vector<8x256xf32>
    %9 = vector.extract_strided_slice %3 {offsets = [16, 0], sizes = [8, 256], strides = [1, 1]} : vector<24x256xf32> to vector<8x256xf32>
    %10 = tpu.iota {dimensions = array<i32: 0>} : vector<8x256xi32>
    %cst_6 = arith.constant dense<0xFF800000> : vector<256xf32>
    %11 = vector.multi_reduction <maximumf>, %8, %cst_6 [0] : vector<8x256xf32> to vector<256xf32>
    %12 = vector.shape_cast %11 : vector<256xf32> to vector<1x256xf32>
    %13 = vector.broadcast %12 : vector<1x256xf32> to vector<8x256xf32>
    %14 = arith.cmpf oeq, %8, %13 : vector<8x256xf32>
    %c8_i32 = arith.constant 8 : i32
    %15 = vector.broadcast %c8_i32 : i32 to vector<8x256xi32>
    %16 = arith.select %14, %10, %15 : vector<8x256xi1>, vector<8x256xi32>
    %cst_7 = arith.constant dense<2147483647> : vector<256xi32>
    %17 = vector.multi_reduction <minsi>, %16, %cst_7 [0] : vector<8x256xi32> to vector<256xi32>
    %18 = vector.shape_cast %17 : vector<256xi32> to vector<1x256xi32>
    %19 = vector.broadcast %18 : vector<1x256xi32> to vector<8x256xi32>
    %20 = arith.cmpi eq, %19, %10 : vector<8x256xi32>
    %21 = arith.extui %20 : vector<8x256xi1> to vector<8x256xi32>
    %22 = arith.sitofp %21 : vector<8x256xi32> to vector<8x256xf32>
    %cst_8 = arith.constant dense<0xFF800000> : vector<8xf32>
    %23 = vector.multi_reduction <maximumf>, %22, %cst_8 [1] : vector<8x256xf32> to vector<8xf32>
    %24 = vector.shape_cast %23 : vector<8xf32> to vector<8x1xf32>
    %cst_9 = arith.constant dense<0.000000e+00> : vector<8x8xf32>
    %25 = tpu.matmul %22, %9, %cst_9 {dimension_numbers = #tpu.dot_dimension_numbers<[1], [1], [0], [0], [0, 0, 1, 0], [], []>} : vector<8x256xf32>, vector<8x256xf32>, vector<8x8xf32> -> vector<8x8xf32>
    %cst_10 = arith.constant 3.906250e-03 : f32
    %26 = vector.broadcast %cst_10 : f32 to vector<8x8xf32>
    %27 = arith.mulf %25, %26 : vector<8x8xf32>
    %28 = vector.shape_cast %7 : vector<16x256xf32> to vector<1x16x256xf32>
    %c0_11 = arith.constant 0 : index
    %c0_12 = arith.constant 0 : index
    %c0_13 = arith.constant 0 : index
    %29 = vector.load %arg4[%c0_11, %c0_12, %c0_13] : memref<1x16x256xf32, #tpu.memory_space<vmem>>, vector<1x16x256xf32>
    tpu.vector_store %arg4[%c0_11, %c0_12, %c0_13], %28 {strides = array<i32>} : memref<1x16x256xf32, #tpu.memory_space<vmem>>, vector<1x16x256xf32>,
    %cst_14 = arith.constant 0.000000e+00 : f32
    %30 = vector.broadcast %cst_14 : f32 to vector<1x8x128xf32>
    %c0_15 = arith.constant 0 : index
    %c0_16 = arith.constant 0 : index
    %c0_17 = arith.constant 0 : index
    %31 = vector.load %arg5[%c0_15, %c0_16, %c0_17] : memref<1x8x128xf32, #tpu.memory_space<vmem>>, vector<1x8x128xf32>
    tpu.vector_store %arg5[%c0_15, %c0_16, %c0_17], %30 {strides = array<i32>} : memref<1x8x128xf32, #tpu.memory_space<vmem>>, vector<1x8x128xf32>,
    %32 = vector.shape_cast %27 : vector<8x8xf32> to vector<1x8x8xf32>
    %c0_18 = arith.constant 0 : index
    %c0_19 = arith.constant 0 : index
    %c0_20 = arith.constant 0 : index
    %33 = vector.load %arg5[%c0_18, %c0_19, %c0_20] : memref<1x8x128xf32, #tpu.memory_space<vmem>>, vector<1x8x8xf32>
    tpu.vector_store %arg5[%c0_18, %c0_19, %c0_20], %32 {strides = array<i32>} : memref<1x8x128xf32, #tpu.memory_space<vmem>>, vector<1x8x8xf32>,
    %34 = vector.shape_cast %24 : vector<8x1xf32> to vector<1x8x1xf32>
    %c0_21 = arith.constant 0 : index
    %c0_22 = arith.constant 0 : index
    %c8 = arith.constant 8 : index
    %35 = vector.load %arg5[%c0_21, %c0_22, %c8] : memref<1x8x128xf32, #tpu.memory_space<vmem>>, vector<1x8x1xf32>
    tpu.vector_store %arg5[%c0_21, %c0_22, %c8], %34 {strides = array<i32>} : memref<1x8x128xf32, #tpu.memory_space<vmem>>, vector<1x8x1xf32>,
    return
  }
  func.func @transform_0(%arg0: i32) -> (i32, i32, i32) {
    %c0_i32 = arith.constant 0 : i32
    %c0_i32_0 = arith.constant 0 : i32
    %c0_i32_1 = arith.constant 0 : i32
    return %arg0, %c0_i32, %c0_i32_0 : i32, i32, i32
  }
  func.func @transform_1(%arg0: i32) -> (i32, i32) {
    %c0_i32 = arith.constant 0 : i32
    %c0_i32_0 = arith.constant 0 : i32
    %c0_i32_1 = arith.constant 0 : i32
    return %c0_i32, %c0_i32_0 : i32, i32
  }
  func.func @transform_2(%arg0: i32) -> (i32, i32) {
    %c0_i32 = arith.constant 0 : i32
    %c0_i32_0 = arith.constant 0 : i32
    %c0_i32_1 = arith.constant 0 : i32
    return %c0_i32, %c0_i32_0 : i32, i32
  }
  func.func @transform_3(%arg0: i32) -> (i32, i32, i32) {
    %c0_i32 = arith.constant 0 : i32
    %c0_i32_0 = arith.constant 0 : i32
    %c0_i32_1 = arith.constant 0 : i32
    return %arg0, %c0_i32, %c0_i32_0 : i32, i32, i32
  }
  func.func @transform_4(%arg0: i32) -> (i32, i32, i32) {
    %c0_i32 = arith.constant 0 : i32
    %c0_i32_0 = arith.constant 0 : i32
    %c0_i32_1 = arith.constant 0 : i32
    return %arg0, %c0_i32, %c0_i32_0 : i32, i32, i32
  }
}

</mosaic_0001>

<bundles_post_ra>
// kernel: encnet_forward.1
= control target key start
LH: loop header
LB: loop body
LE: loop exit
PB: predicated region body
PF: predicated region fallthrough
CT: control target
= control target key end

     0   :  { %s557_s15 = smov 0   ;;  %s601_s0 = inlined_call_operand.vmem [shape: f32[2,4,256], index: 0, kind: input, shape index: {}]   ;;  %s602_s1 = inlined_call_operand.vmem [shape: f32[24,4], index: 1, kind: input, shape index: {}]   ;;  %s603_s2 = inlined_call_operand.vmem [shape: f32[16,1], index: 2, kind: input, shape index: {}]   ;;  %s604_s3 = inlined_call_operand.vmem [shape: f32[2,16,256], index: 3, kind: output, shape index: {0}]   ;;  %s605_s4 = inlined_call_operand.vmem [shape: f32[2,8,128], index: 4, kind: output, shape index: {1}]  }
   0x1 LB: > { %s481_s16 = sadd.s32 4294967295, %s527_s15   ;;  %p485_p0 = scmp.ge.s32.totalorder %s527_s15, 1  ;;  %s527_s15 = sphi %s557_s15, %s15_s15  }
   0x2   : > { %p165_p1 = scmp.lt.s32.totalorder %s527_s15, 3 }
   0x4   : > { %p166_p2 = pnand %p485_p0, %p165_p1 }
   0x5   : > { %p195_p3 = scmp.lt.s32.totalorder (!%p166_p2), %s481_s16, 1 }
   0x6   : > { %169 = sbr.rel (%p166_p2) target bundleno = 317 (0x13d), region = 32 }
   0xb   : > { %v284_v0 = vld [vmem:[%s603_s2] sm:$0xff]  ;;  %v529_v1 = vmov 0   ;;  %s607_s16 = smov (!%p195_p3, %s481_s16), 1  ;;  %v285_v3 = vld [vmem:[%s603_s2 + $0x8] sm:$0xff]  ;;  %vm227_vm0 = vcmask 1043456   ;;  %vm217_vm1 = vcmask 31744   ;;  %v300_v22 = vlaneseq }
   0xc   : > { %520 = vset.pattern.permute.xlu0 %v529_v1  ;;  %s505_s19 = sshll.u32 %s607_s16, 3  ;;  %v210_v4 = vld [vmem:[%s602_s1] sm:$0xff]  ;;  %v212_v7 = vld [vmem:[%s602_s1 + $0x10] sm:$0xff]  ;;  %v211_v8 = vld [vmem:[%s602_s1 + $0x8] sm:$0xff]  ;;  %s506_s8 = sshll.u32 %s607_s16, 5  ;;  %v530_v10 = vmov 0.0  }
   0xd   : > { %288 = vperm.xlu0 %520, %v284_v0   ;;  %s199_s22 = scalar_lea.vmem %s601_s0, %s505_s19  ;;  %s589_s7 = scalar_lea.vmem %s605_s4, %s505_s19  ;;  %v301_v33 = vshrl.u32 %v300_v22, 7  ;;  %v531_v50 = vmov 1.0   ;;  %vm391_vm12 = vcmask 64512   ;;  %vm393_vm13 = vcmask 72768  }
   0xe   : > { %v209_v2 = vld [vmem:[%s199_s22] sm:$0xff]  ;;  %390 = vst [vmem:[%s589_s7] sm:$0xff] %v530_v10  ;;  %s204_s11 = scalar_lea.vmem %s604_s3, %s506_s8 }
   0xf   : > { %214 = vst [vmem:[#allocation1] ss:$2 sm:$0xff] %v209_v2 }
  0x15   : > { %293 = vperm.xlu0 %520, %v285_v3  }
  0x16   : > { %v215_v5 = vld.sshfl [vmem:[#allocation1] sm:$0xff pattern:$0x75316420]  ;;  %v216_v6 = vld.sshfl [vmem:[#allocation1 + $0x8] sm:$0xff pattern:$0x75316420] }
  0x17   : > { %491 = vmatpush.msk.msra.mxu0 %vm227_vm0, %v215_v5  ;;  %495 = vmatpush.msk.msra.mxu1 %vm227_vm0, %v216_v6 }
  0x18   : > { %492 = vmatmul.msk.f32.vlgmr.msra.gmra.mxu0 %vm217_vm1, %v210_v4  ;;  %496 = vmatmul.msk.f32.vlgmr.msra.gmra.mxu1 %vm217_vm1, %v210_v4 }
  0x19   : > { %507 = vmatpush.msk.msra.mxu2 %vm227_vm0, %v215_v5  ;;  %508 = vmatpush.msk.msra.mxu3 %vm227_vm0, %v216_v6 }
  0x1a   : > { %494 = vmatmul.msk.f32.vlgmr.msra.gmra.mxu2 %vm217_vm1, %v212_v7  ;;  %498 = vmatmul.msk.f32.vlgmr.msra.gmra.mxu3 %vm217_vm1, %v212_v7 }
  0x20   : > { %493 = vmatmul.msk.f32.gmra.mxu0 %vm217_vm1, %v211_v8  ;;  %497 = vmatmul.msk.f32.gmra.mxu1 %vm217_vm1, %v211_v8 }
  0x7f   : > { %v289_v9 = vpop.permute.xlu0 %288 }
  0x87   : > { %v294_v19 = vpop.permute.xlu0 %293 }
  0x95   : > { %v249_v11 = vpop.f32.mrf.mxu0  ;;  %v275_v12 = vpop.f32.mrf.mxu1 }
  0x96   : > { %v296_v13 = vadd.f32 %v289_v9, %v249_v11  ;;  %v297_v14 = vadd.f32 %v289_v9, %v275_v12 }
  0x98   : > { %v302_v15 = vrot.slane %v296_v13, 4  ;;  %v308_v16 = vrot.slane %v297_v14, 4  ;;  %386 = vst [vmem:[%s204_s11] sm:$0xff] %v296_v13 }
  0x99   : > { %387 = vst [vmem:[%s204_s11 + $0x8] sm:$0xff] %v297_v14 }
  0x9a   : > { %v303_v17 = vmax.f32 %v296_v13, %v302_v15  ;;  %v309_v18 = vmax.f32 %v297_v14, %v308_v16 }
  0x9c   : > { %v304_v20 = vrot.slane %v303_v17, 2  ;;  %v310_v21 = vrot.slane %v309_v18, 2 }
  0x9d   : > { %v252_v23 = vpop.f32.mrf.mxu0  ;;  %v278_v24 = vpop.f32.mrf.mxu1 }
  0x9e   : > { %v305_v25 = vmax.f32 %v303_v17, %v304_v20  ;;  %v311_v26 = vmax.f32 %v309_v18, %v310_v21  ;;  %v298_v27 = vadd.f32 %v294_v19, %v252_v23  ;;  %v299_v28 = vadd.f32 %v294_v19, %v278_v24  ;;  %v255_v29 = vpop.f32.mrf.mxu2  ;;  %v281_v30 = vpop.f32.mrf.mxu3 }
  0x9f   : > { %360 = vmatpush.xpose.msrb.mxu2 %v255_v29  ;;  %380 = vmatpush.xpose.msrb.mxu3 %v281_v30 }
  0xa0   : > { %v306_v31 = vrot.slane %v305_v25, 1  ;;  %v312_v32 = vrot.slane %v311_v26, 1  ;;  %388 = vst [vmem:[%s204_s11 + $0x10] sm:$0xff] %v298_v27 }
  0xa1   : > { %389 = vst [vmem:[%s204_s11 + $0x18] sm:$0xff] %v299_v28 }
  0xa2   : > { %v307_v34 = vmax.f32 %v305_v25, %v306_v31  ;;  %v313_v35 = vmax.f32 %v311_v26, %v312_v32 }
  0xa4   : > { %vm314_vm2 = vcmp.eq.f32.partialorder %v296_v13, %v307_v34  ;;  %vm315_vm3 = vcmp.eq.f32.partialorder %v297_v14, %v313_v35 }
  0xa5   : > { %v316_v36 = vsel %vm314_vm2, %v301_v33, 8  ;;  %v317_v37 = vsel %vm315_vm3, %v301_v33, 8 }
  0xa6   : > { %v318_v38 = vrot.slane %v316_v36, 4  ;;  %v327_v39 = vrot.slane %v317_v37, 4 }
  0xa8   : > { %vm319_vm4 = vcmp.lt.s32.totalorder %v316_v36, %v318_v38  ;;  %vm328_vm5 = vcmp.lt.s32.totalorder %v317_v37, %v327_v39 }
  0xa9   : > { %v320_v40 = vsel %vm319_vm4, %v316_v36, %v318_v38  ;;  %v329_v41 = vsel %vm328_vm5, %v317_v37, %v327_v39 }
  0xaa   : > { %v321_v42 = vrot.slane %v320_v40, 2  ;;  %v330_v43 = vrot.slane %v329_v41, 2 }
  0xac   : > { %vm322_vm6 = vcmp.lt.s32.totalorder %v320_v40, %v321_v42  ;;  %vm331_vm7 = vcmp.lt.s32.totalorder %v329_v41, %v330_v43 }
  0xad   : > { %v323_v44 = vsel %vm322_vm6, %v320_v40, %v321_v42  ;;  %v332_v45 = vsel %vm331_vm7, %v329_v41, %v330_v43 }
  0xae   : > { %v324_v46 = vrot.slane %v323_v44, 1  ;;  %v333_v47 = vrot.slane %v332_v45, 1 }
  0xb0   : > { %vm325_vm8 = vcmp.lt.s32.totalorder %v323_v44, %v324_v46  ;;  %vm334_vm9 = vcmp.lt.s32.totalorder %v332_v45, %v333_v47 }
  0xb1   : > { %v326_v48 = vsel %vm325_vm8, %v323_v44, %v324_v46  ;;  %v335_v49 = vsel %vm334_vm9, %v332_v45, %v333_v47 }
  0xb2   : > { %vm336_vm10 = vcmp.eq.s32.totalorder %v326_v48, %v301_v33  ;;  %vm337_vm11 = vcmp.eq.s32.totalorder %v335_v49, %v301_v33 }
  0xb3   : > { %501 = vmatmul.msk.f32.vlgmr.msrb.gmra.mxu2 %vm336_vm10, %v531_v50  ;;  %502 = vmatmul.msk.f32.vlgmr.msrb.gmra.mxu3 %vm337_vm11, %v531_v50  ;;  %v499_v51 = vsel %vm336_vm10, 1.0, %v530_v10  ;;  %v500_v52 = vsel %vm337_vm11, 1.0, %v530_v10 }
  0xb4   : > { %v342_v53 = vmax.f32 %v499_v51, %v500_v52 }
  0xb6   : > { %343 = vmax.xlane.f32.xlu1 %v342_v53 }
 0x129   : > { %v344_v58 = vpop.xlane.xlu1 %343 }
 0x136   : > { %v362_v54 = vpop.f32.mrf.mxu2  ;;  %v382_v55 = vpop.f32.mrf.mxu3 }
 0x137   : > { %v383_v56 = vadd.f32 %v382_v55, %v362_v54 }
 0x139   : > { %v385_v57 = vmul.f32 0.00390625, %v383_v56 }
 0x13b   : > { %392 = vst.msk [vmem:[%s589_s7] sm:$0xff] %vm391_vm12, %v385_v57 }
 0x13c   : > { %394 = vst.msk [vmem:[%s589_s7] sm:$0xff] %vm393_vm13, %v344_v58 }
 0x13d PF: > { %s15_s15 = sadd.s32 1, %s527_s15  }
 0x13e   : > { %p12_p4 = scmp.ge.s32.totalorder %s15_s15, 4  }
 0x140   :  { %14 = sbr.rel (!%p12_p4) target bundleno = 1 (0x1), region = 74 }

</bundles_post_ra>
